<compile_context>
chip_gen: v7x
topology: tpu7x:2x2x1
jax: 0.10.0
libtpu: 0.0.40
codegen_flags: <defaults>
</compile_context>

<pallas_src>
import jax
import jax.numpy as jnp
from jax.experimental import pallas as pl
from jax.experimental.pallas import tpu as pltpu


_NEG_BIG = -1e30  # bias fill for padded class columns -> exp() underflows to 0


def _round_up(x: int, m: int) -> int:
    return ((x + m - 1) // m) * m


def _shap_kernel(x_ref, w_ref, b_ref, o_ref, acc_ref):
    """One (batch-tile, k-tile) grid step of softmax(x @ W + b, axis=1)."""
    k = pl.program_id(1)

    @pl.when(k == 0)
    def _():
        acc_ref[...] = jnp.zeros_like(acc_ref)

    # bf16 x bf16 -> f32 accumulation on the MXU.
    acc_ref[...] += jnp.dot(
        x_ref[...], w_ref[...], preferred_element_type=jnp.float32
    )

    @pl.when(k == pl.num_programs(1) - 1)
    def _():
        # Bias add + numerically-stable softmax only on the last reduction step.
        logits = acc_ref[...] + b_ref[...]           # padded cols: -1e30 bias
        m = jnp.max(logits, axis=1, keepdims=True)
        e = jnp.exp(logits - m)
        s = jnp.sum(e, axis=1, keepdims=True)
        o_ref[...] = (e * pl.reciprocal(s, approx=True)).astype(o_ref.dtype)


def shap_model_forward(x_nchw, w, b, *, tb=128, tk=512, n_lane=128):
    """x_nchw: [B, C, H, W]; w: [D, N]; b: [N]. Returns softmax probs [B, N]."""
    B = x_nchw.shape[0]
    D = 1
    for d in x_nchw.shape[1:]:
        D *= int(d)
    N = w.shape[1]

    # --- glue: flatten, pad to TPU-friendly tiles, cast matmul operands to bf16
    TB = tb if B >= tb else _round_up(max(B, 8), 16)   # sublane / bf16-pack ok
    B_pad = _round_up(B, TB)
    TK = tk if D >= tk else _round_up(D, 128)
    D_pad = _round_up(D, TK)
    N_pad = _round_up(N, n_lane)                       # lane-dense output

    x2d = x_nchw.reshape(B, D).astype(jnp.float32)
    x_p = jnp.zeros((B_pad, D_pad), jnp.bfloat16).at[:B, :D].set(
        x2d.astype(jnp.bfloat16))
    w_p = jnp.zeros((D_pad, N_pad), jnp.bfloat16).at[:D, :N].set(
        w.astype(jnp.bfloat16))
    b_p = jnp.full((1, N_pad), _NEG_BIG, jnp.float32).at[0, :N].set(
        b.astype(jnp.float32))

    nb, nk = B_pad // TB, D_pad // TK

    out = pl.pallas_call(
        _shap_kernel,
        out_shape=jax.ShapeDtypeStruct((B_pad, N_pad), jnp.float32),
        grid_spec=pltpu.PrefetchScalarGridSpec(
            num_scalar_prefetch=0,
            grid=(nb, nk),                             # reduction axis innermost
            in_specs=[
                pl.BlockSpec((TB, TK), lambda i, k: (i, k)),      # X tile
                pl.BlockSpec((TK, N_pad), lambda i, k: (k, 0)),   # W tile
                pl.BlockSpec((1, N_pad), lambda i, k: (0, 0)),    # bias
            ],
            out_specs=pl.BlockSpec((TB, N_pad), lambda i, k: (i, 0)),
            scratch_shapes=[pltpu.VMEM((TB, N_pad), jnp.float32)],
        ),
        compiler_params=pltpu.CompilerParams(
            dimension_semantics=("parallel", "arbitrary"),
            vmem_limit_bytes=32 * 1024 * 1024,
        ),
    )(x_p, w_p, b_p)

    return out[:B, :N]


if __name__ == "__main__":
    # Small deterministic shapes consistent with the forward pass.
    B, C, H, W = 2, 4, 16, 16
    D = C * H * W
    N = 10  # number of classes for the wrapped classifier

    key = jax.random.PRNGKey(0)
    kx, kw, kb = jax.random.split(key, 3)
    x = jax.random.normal(kx, (B, C, H, W), dtype=jnp.float32)
    w = jax.random.normal(kw, (D, N), dtype=jnp.float32) * 0.02
    b = jax.random.normal(kb, (N,), dtype=jnp.float32) * 0.01

    out = shap_model_forward(x, w, b)
    out = jax.block_until_ready(out)
    assert out.shape == (B, N)

    # Reference with the same bf16 operand precision (f32 accumulation).
    x_bf = x.reshape(B, D).astype(jnp.bfloat16).astype(jnp.float32)
    w_bf = w.astype(jnp.bfloat16).astype(jnp.float32)
    ref_bf = jax.nn.softmax(x_bf @ w_bf + b, axis=1)
    assert jnp.allclose(out, ref_bf, atol=5e-3, rtol=5e-3)

    # Looser sanity check against the full-f32 reference.
    ref_f32 = jax.nn.softmax(x.reshape(B, D) @ w + b, axis=1)
    assert jnp.allclose(out, ref_f32, atol=5e-2, rtol=5e-2)

    # Rows sum to 1 (approx reciprocal -> slightly loosened tolerance).
    assert jnp.allclose(jnp.sum(out, axis=1), jnp.ones((B,)), atol=2e-3)

    print("KERNEL_OK")
</pallas_src>

<mosaic_0001>
module attributes {stable_mosaic.version = 11 : i64} {
  func.func @_shap_kernel(%arg0: i32, %arg1: i32, %arg2: memref<16x512xbf16, #tpu.memory_space<vmem>>, %arg3: memref<512x128xbf16, #tpu.memory_space<vmem>>, %arg4: memref<1x128xf32, #tpu.memory_space<vmem>>, %arg5: memref<16x128xf32, #tpu.memory_space<vmem>>, %arg6: memref<16x128xf32, #tpu.memory_space<vmem>>) attributes {dimension_semantics = [#tpu.dimension_semantics<parallel>, #tpu.dimension_semantics<arbitrary>], iteration_bounds = array<i64: 1, 2>, scalar_prefetch = 0 : i64, scratch_operands = 1 : i64, tpu.core_type = #tpu.core_type<tc>, window_params = [{transform_indices = @transform_0, window_bounds = array<i64: 16, 512>}, {transform_indices = @transform_1, window_bounds = array<i64: 512, 128>}, {pipeline_mode = #tpu.pipeline_mode<synchronous>, transform_indices = @transform_2, window_bounds = array<i64: 1, 128>}, {transform_indices = @transform_3, window_bounds = array<i64: 16, 128>}]} {
    %c0_i32 = arith.constant 0 : i32
    %0 = arith.cmpi eq, %arg1, %c0_i32 : i32
    %1 = arith.extui %0 : i1 to i32
    %c0_i32_0 = arith.constant 0 : i32
    %2 = arith.cmpi ne, %1, %c0_i32_0 : i32
    scf.if %2 {
      %cst_9 = arith.constant 0.000000e+00 : f32
      %12 = vector.broadcast %cst_9 : f32 to vector<16x128xf32>
      %c0_10 = arith.constant 0 : index
      %c0_11 = arith.constant 0 : index
      %13 = vector.load %arg6[%c0_10, %c0_11] : memref<16x128xf32, #tpu.memory_space<vmem>>, vector<16x128xf32>
      tpu.vector_store %arg6[%c0_10, %c0_11], %12 {strides = array<i32>} : memref<16x128xf32, #tpu.memory_space<vmem>>, vector<16x128xf32>,
    } else {
    }
    %c0 = arith.constant 0 : index
    %c0_1 = arith.constant 0 : index
    %3 = vector.load %arg6[%c0, %c0_1] : memref<16x128xf32, #tpu.memory_space<vmem>>, vector<16x128xf32>
    %c0_2 = arith.constant 0 : index
    %c0_3 = arith.constant 0 : index
    %4 = vector.load %arg2[%c0_2, %c0_3] : memref<16x512xbf16, #tpu.memory_space<vmem>>, vector<16x512xbf16>
    %c0_4 = arith.constant 0 : index
    %c0_5 = arith.constant 0 : index
    %5 = vector.load %arg3[%c0_4, %c0_5] : memref<512x128xbf16, #tpu.memory_space<vmem>>, vector<512x128xbf16>
    %cst = arith.constant dense<0.000000e+00> : vector<16x128xf32>
    %6 = tpu.matmul %4, %5, %cst {dimension_numbers = #tpu.dot_dimension_numbers<[1], [0], [0], [1], [0, 0, 1, 1], [], []>} : vector<16x512xbf16>, vector<512x128xbf16>, vector<16x128xf32> -> vector<16x128xf32>
    %7 = arith.addf %3, %6 : vector<16x128xf32>
    %c0_6 = arith.constant 0 : index
    %c0_7 = arith.constant 0 : index
    %8 = vector.load %arg6[%c0_6, %c0_7] : memref<16x128xf32, #tpu.memory_space<vmem>>, vector<16x128xf32>
    tpu.vector_store %arg6[%c0_6, %c0_7], %7 {strides = array<i32>} : memref<16x128xf32, #tpu.memory_space<vmem>>, vector<16x128xf32>,
    %c1_i32 = arith.constant 1 : i32
    %9 = arith.cmpi eq, %arg1, %c1_i32 : i32
    %10 = arith.extui %9 : i1 to i32
    %c0_i32_8 = arith.constant 0 : i32
    %11 = arith.cmpi ne, %10, %c0_i32_8 : i32
    scf.if %11 {
      %c0_9 = arith.constant 0 : index
      %c0_10 = arith.constant 0 : index
      %12 = vector.load %arg6[%c0_9, %c0_10] : memref<16x128xf32, #tpu.memory_space<vmem>>, vector<16x128xf32>
      %c0_11 = arith.constant 0 : index
      %c0_12 = arith.constant 0 : index
      %13 = vector.load %arg4[%c0_11, %c0_12] : memref<1x128xf32, #tpu.memory_space<vmem>>, vector<1x128xf32>
      %14 = vector.broadcast %13 : vector<1x128xf32> to vector<16x128xf32>
      %15 = arith.addf %12, %14 : vector<16x128xf32>
      %cst_13 = arith.constant dense<0xFF800000> : vector<16xf32>
      %16 = vector.multi_reduction <maximumf>, %15, %cst_13 [1] : vector<16x128xf32> to vector<16xf32>
      %17 = vector.shape_cast %16 : vector<16xf32> to vector<16x1xf32>
      %18 = vector.broadcast %17 : vector<16x1xf32> to vector<16x128xf32>
      %19 = arith.subf %15, %18 : vector<16x128xf32>
      %20 = math.exp %19 : vector<16x128xf32>
      %cst_14 = arith.constant dense<0.000000e+00> : vector<16xf32>
      %21 = vector.multi_reduction <add>, %20, %cst_14 [1] : vector<16x128xf32> to vector<16xf32>
      %22 = vector.shape_cast %21 : vector<16xf32> to vector<16x1xf32>
      %23 = tpu.reciprocal %22 {approx = true} : vector<16x1xf32> -> vector<16x1xf32>
      %24 = vector.broadcast %23 : vector<16x1xf32> to vector<16x128xf32>
      %25 = arith.mulf %20, %24 : vector<16x128xf32>
      %c0_15 = arith.constant 0 : index
      %c0_16 = arith.constant 0 : index
      %26 = vector.load %arg5[%c0_15, %c0_16] : memref<16x128xf32, #tpu.memory_space<vmem>>, vector<16x128xf32>
      tpu.vector_store %arg5[%c0_15, %c0_16], %25 {strides = array<i32>} : memref<16x128xf32, #tpu.memory_space<vmem>>, vector<16x128xf32>,
    } else {
    }
    return
  }
  func.func @transform_0(%arg0: i32, %arg1: i32) -> (i32, i32) {
    %c0_i32 = arith.constant 0 : i32
    return %arg0, %arg1 : i32, i32
  }
  func.func @transform_1(%arg0: i32, %arg1: i32) -> (i32, i32) {
    %c0_i32 = arith.constant 0 : i32
    %c0_i32_0 = arith.constant 0 : i32
    return %arg1, %c0_i32 : i32, i32
  }
  func.func @transform_2(%arg0: i32, %arg1: i32) -> (i32, i32) {
    %c0_i32 = arith.constant 0 : i32
    %c0_i32_0 = arith.constant 0 : i32
    %c0_i32_1 = arith.constant 0 : i32
    return %c0_i32, %c0_i32_0 : i32, i32
  }
  func.func @transform_3(%arg0: i32, %arg1: i32) -> (i32, i32) {
    %c0_i32 = arith.constant 0 : i32
    %c0_i32_0 = arith.constant 0 : i32
    return %arg0, %c0_i32 : i32, i32
  }
}

</mosaic_0001>

<bundles_post_ra>
// kernel: tpu_custom_call.1
= control target key start
LH: loop header
LB: loop body
LE: loop exit
PB: predicated region body
PF: predicated region fallthrough
CT: control target
= control target key end

     0   :  { %8 = vsyncpa [#allocation4], 0  ;;  %s1395_s0 = inlined_call_operand.hbm [shape: bf16[16,1024], index: 0, kind: input, shape index: {}]   ;;  %s1396_s1 = inlined_call_operand.hbm [shape: bf16[1024,128], index: 1, kind: input, shape index: {}]   ;;  %s1397_s2 = inlined_call_operand.vmem [shape: f32[1,128], index: 2, kind: input, shape index: {}]   ;;  %s1398_s3 = inlined_call_operand.hbm [shape: f32[16,128], index: 3, kind: output, shape index: {}]  }
   0x1   :  { %10 = vsyncpa [#allocation4 + $0x1], 0 }
   0x2   :  { %11 = vsyncpa [#allocation7], 0 }
   0x3   :  { %13 = vsyncpa [#allocation7 + $0x1], 0 }
   0x4   :  { %14 = vsyncpa [#allocation5], 0  ;;  %s1151_s12 = smov 0   ;;  %s1153_s13 = smov 0  }
   0x5   :  { %s1155_s14 = smov 0   ;;  %s1157_s15 = smov 0  }
   0x6   :  { %s1159_s16 = smov 0   ;;  %s1161_s17 = smov 0  }
   0x7 LB: > { %s752_s18 = sadd.s32 4294967295, %s1118_s17   ;;  %s29_s19 = sadd.s32 1, %s1114_s16  ;;  %s1118_s17 = sphi %s1161_s17, %s20_s17   ;;  %s1114_s16 = sphi %s1159_s16, %s1411_s16   ;;  %s1110_s15 = sphi %s1157_s15, %s1410_s15   ;;  %s1106_s14 = sphi %s1155_s14, %s1409_s14   ;;  %s1102_s13 = sphi %s1153_s13, %s1408_s13   ;;  %s1098_s12 = sphi %s1151_s12, %s1407_s12  }
   0x8   : > { %p30_p0 = scmp.ge.s32.totalorder %s29_s19, 2  ;;  %s41_s20 = sadd.s32 1, %s1106_s14 }
   0x9   : > { %p48_p1 = scmp.ne.s32.totalorder %s1106_s14, %s1102_s13  ;;  %p49_p2 = scmp.eq.s32.totalorder %s1118_s17, 0 }
   0xa   : > { %s1413_s19 = smov (%p30_p0, %s29_s19), 0  ;;  %p54_p4 = scmp.ne.s32.totalorder %s1102_s13, %s1098_s12 }
   0xb   : > { %p1187_p3 = por %p49_p2, %p48_p1  ;;  %s37_s22 = ssub.s32 %s1114_s16, %s1413_s19 }
   0xc   : > { %p55_p5 = scmp.eq.s32.totalorder %s752_s18, 0  ;;  %p39_p6 = scmp.eq.s32.totalorder %s37_s22, 0 }
   0xd   : > { %p868_p8 = scmp.lt.s32.totalorder %s1118_s17, 2  ;;  %s1205_s25 = sand.u32 1, %s1106_s14  }
   0xe   : > { %p1196_p7 = por %p55_p5, %p54_p4  ;;  %s807_s26 = sshll.u32 %s1114_s16, 8 }
   0xf   : > { %s1202_s24 = scalar_select %p39_p6, %s1106_s14, %s41_s20  }
  0x10   : > { %s1401_s23 = scalar_select %p1196_p7, 1, 0 }
  0x11   : > { %s755_s27 = sshll.u32 %s1205_s25, 5  ;;  %s1212_s30 = scalar_lea.hbm %s1395_s0, %s807_s26 }
  0x12   : > { %s158_s4 = scalar_lea.vmem [#allocation3], %s755_s27  ;;  %p1216_p9 = pnand %p868_p8, %p1187_p3 }
  0x13   : > { %s168_s5 = sshll.u32 %s158_s4, 4  ;;  %s155_s7 = scalar_lea.sflag [#allocation4], %s1205_s25  ;;  %s1220_s5 = int_to_ptr.vmem [resolvable:$true] %s168_s5 }
  0x14   : > { %s974_s8 = scalar_lea.hbm %s1212_s30, 512  ;;  %p976_p12 = pneg %p1216_p9 }
  0x15   : > { %p975_p11 = scmp.ne.s32.totalorder %s1212_s30, %s974_s8  ;;  %s979_s11 = scalar_lea.hbm %s1395_s0, 1024 }
  0x16   : > { %p980_p1 = scmp.lt.u32.totalorder %s1212_s30, %s1395_s0  ;;  %p981_p2 = scmp.lt.u32.totalorder %s979_s11, %s974_s8 }
  0x17   : > { %p977_p13 = pnand %p976_p12, %p975_p11  ;;  %p983_p4 = scmp.lt.u32.totalorder %s974_s8, %s1212_s30 }
  0x18   : > { %p982_p3 = por %p981_p2, %p980_p1 }
  0x19   : > { %p978_p0 = pneg %p977_p13 }
  0x1a   : > { %p984_p5 = por %p983_p4, %p982_p3 }
  0x1c   : > { %p985_p6 = pnand %p984_p5, %p978_p0 }
  0x1e   : > { %988 = shalt.err (!%p985_p6)
}
  0x1f   : > { %s989_s21 = scalar_lea.vmem %s1220_s5, 512  ;;  %s1120_s22 = smov [#allocation3]  }
  0x20   : > { %p990_p8 = scmp.ne.s32.totalorder %s1220_s5, %s989_s21  ;;  %s994_s26 = sshll.u32 %s1120_s22, 4  ;;  %s995_s26 = int_to_ptr.vmem [resolvable:$false] %s994_s26 }
  0x21   : > { %s996_s27 = scalar_lea.vmem %s995_s26, 1024  ;;  %p997_p10 = scmp.lt.s32.totalorder %s1220_s5, %s995_s26 }
  0x22   : > { %p992_p11 = pnand %p990_p8, %p976_p12  ;;  %p998_p1 = scmp.lt.s32.totalorder %s996_s27, %s989_s21 }
  0x24   : > { %p993_p13 = pneg %p992_p11  ;;  %p999_p2 = por %p998_p1, %p997_p10 }
  0x26   : > { %p1000_p3 = pnand %p999_p2, %p993_p13 }
  0x28   : > { %1003 = shalt.err (!%p1000_p3)
}
  0x29   : > { %s1121_s28 = smov 512   ;;  %s1122_s29 = smov 256  }
  0x2a   : > { %s1123_s4 = smov 16   ;;  %p197_p0 = scmp.lt.s32.totalorder %s1118_s17, 3 }
  0x2b   : > { %864 = dma.hbm_to_vmem [thread:$0]  (!%p1216_p9), %s1212_s30, 512, %s1220_s5, %s155_s7, %s1121_s28, %s1122_s29, %s1123_s4  }
  0x2c   : > { %s758_s8 = sshll.u32 %s1205_s25, 8  ;;  %s808_s9 = sshll.u32 %s1114_s16, 12 }
  0x2d   : > { %p1403_p10 = scmp.ge.s32.totalorder %s1118_s17, 1  ;;  %s1263_s20 = scalar_lea.hbm %s1396_s1, %s808_s9 }
  0x2e   : > { %s182_s21 = scalar_lea.vmem [#allocation6], %s758_s8  ;;  %s179_s30 = scalar_lea.sflag [#allocation7], %s1205_s25 }
  0x2f   : > { %p1256_p4 = pnand %p1403_p10, %p197_p0  ;;  %s189_s22 = sshll.u32 %s182_s21, 4  ;;  %s1265_s22 = int_to_ptr.vmem [resolvable:$true] %s189_s22 }
  0x30   : > { %s1004_s5 = scalar_lea.hbm %s1263_s20, 4096  ;;  %s1009_s27 = scalar_lea.hbm %s1396_s1, 8192 }
  0x31   : > { %p1005_p5 = scmp.ne.s32.totalorder %s1263_s20, %s1004_s5  ;;  %p1010_p11 = scmp.lt.u32.totalorder %s1263_s20, %s1396_s1 }
  0x32   : > { %p1011_p13 = scmp.lt.u32.totalorder %s1009_s27, %s1004_s5  ;;  %p1013_p2 = scmp.lt.u32.totalorder %s1004_s5, %s1263_s20 }
  0x33   : > { %p1007_p6 = pnand %p1005_p5, %p976_p12 }
  0x34   : > { %p1012_p1 = por %p1011_p13, %p1010_p11 }
  0x35   : > { %p1008_p8 = pneg %p1007_p6 }
  0x36   : > { %p1014_p3 = por %p1013_p2, %p1012_p1 }
  0x38   : > { %p1015_p0 = pnand %p1014_p3, %p1008_p8 }
  0x3a   : > { %1018 = shalt.err (!%p1015_p0)
}
  0x3b   : > { %s1019_s4 = scalar_lea.vmem %s1265_s22, 4096  ;;  %s1124_s8 = smov [#allocation6]  }
  0x3c   : > { %p1020_p10 = scmp.ne.s32.totalorder %s1265_s22, %s1019_s4  ;;  %s1024_s9 = sshll.u32 %s1124_s8, 4  ;;  %s1025_s9 = int_to_ptr.vmem [resolvable:$false] %s1024_s9 }
  0x3d   : > { %s1026_s11 = scalar_lea.vmem %s1025_s9, 8192  ;;  %p1027_p7 = scmp.lt.s32.totalorder %s1265_s22, %s1025_s9 }
  0x3e   : > { %p1022_p5 = pnand %p1020_p10, %p976_p12  ;;  %p1028_p11 = scmp.lt.s32.totalorder %s1026_s11, %s1019_s4 }
  0x40   : > { %p1023_p6 = pneg %p1022_p5  ;;  %p1029_p13 = por %p1028_p11, %p1027_p7 }
  0x42   : > { %p1030_p1 = pnand %p1029_p13, %p1023_p6 }
  0x44   : > { %1033 = shalt.err (!%p1030_p1)
}
  0x45   : > { %s1125_s12 = smov 64   ;;  %s1126_s21 = smov 4  }
  0x46   : > { %867 = dma.hbm_to_vmem [thread:$0]  (!%p1216_p9), %s1263_s20, 4096, %s1265_s22, %s179_s30, %s1125_s12, %s1125_s12, %s1126_s21  }
  0x47   : > { %201 = sbr.rel (%p1256_p4) target bundleno = 698 (0x2ba), region = 32  ;;  %s203_s5 = sand.u32 (!%p1256_p4), 1, %s1102_s13  }
  0x48   : > { %s762_s7 = sshll.u32 (!%p1256_p4), %s203_s5, 5  ;;  %s204_s26 = scalar_lea.sflag (!%p1256_p4), [#allocation4], %s203_s5 }
  0x49   : > { %s1296_s27 = scalar_lea.vmem (!%p1256_p4), [#allocation3], %s762_s7  ;;  %p1405_p7 = scmp.ne.s32.totalorder (!%p1256_p4), %s1401_s23, 0 }
  0x4e   : > { %1085 = dma.done.wait (%p1405_p7), %s204_s26, 512  }
  0x4f   : > { %1087 = vsyncadd (%p1405_p7), %s204_s26, 4294966784  ;;  %s763_s28 = sshll.u32 %s203_s5, 8  ;;  %s213_s6 = scalar_lea.sflag [#allocation7], %s203_s5 }
  0x50   : > { %s1302_s25 = scalar_lea.vmem [#allocation6], %s763_s28 }
  0x51   : > { %1089 = dma.done.wait (%p1405_p7), %s213_s6, 4096  }
  0x52   : > { %1091 = vsyncadd (%p1405_p7), %s213_s6, 4294963200  ;;  %p764_p9 = scmp.ne.s32.totalorder %s1110_s15, 0 }
  0x53   : > { %v1127_v0 = vmov (!%p764_p9), 0.0  }
  0x54   : > { %247 = sbr.rel (%p764_p9) target bundleno = 91 (0x5b), region = 44  ;;  %248 = vst [vmem:[#allocation2] sm:$0xff] (!%p764_p9), %v1127_v0  ;;  %249 = vst [vmem:[#allocation2 + $0x8] sm:$0xff] (!%p764_p9), %v1127_v0 }
  0x5b PF: > { %v928_v1 = vld [vmem:[%s1302_s25 + $0x40] sm:$0xff]   ;;  %v932_v5 = vld [vmem:[%s1302_s25 + $0x48] sm:$0xff]   ;;  %v936_v9 = vld [vmem:[%s1302_s25 + $0x50] sm:$0xff]   ;;  %p801_p12 = scmp.ne.s32.totalorder %s1110_s15, 1 }
  0x5c   : > { %v929_v2 = vld [vmem:[%s1302_s25 + $0xc0] sm:$0xff]   ;;  %809 = vmatprep.subr.bf16.mxu0 %v928_v1  ;;  %v933_v6 = vld [vmem:[%s1302_s25 + $0xc8] sm:$0xff]   ;;  %v937_v10 = vld [vmem:[%s1302_s25 + $0xd0] sm:$0xff]  }
  0x5d   : > { %v930_v3 = vld [vmem:[%s1302_s25] sm:$0xff]   ;;  %831 = vmatprep.subr.bf16.mxu1 %v929_v2  ;;  %v934_v7 = vld [vmem:[%s1302_s25 + $0x8] sm:$0xff]   ;;  %v938_v11 = vld [vmem:[%s1302_s25 + $0x10] sm:$0xff]  }
  0x5e   : > { %v931_v4 = vld [vmem:[%s1302_s25 + $0x80] sm:$0xff]   ;;  %810 = vmatpush3.bf16.msra.mxu0 %v930_v3  ;;  %v935_v8 = vld [vmem:[%s1302_s25 + $0x88] sm:$0xff]   ;;  %v939_v12 = vld [vmem:[%s1302_s25 + $0x90] sm:$0xff]  }
  0x5f   : > { %832 = vmatpush3.bf16.msra.mxu1 %v931_v4  ;;  %811 = vmatprep.subr.bf16.mxu0 %v932_v5  ;;  %v940_v13 = vld [vmem:[%s1302_s25 + $0x58] sm:$0xff]   ;;  %v944_v17 = vld [vmem:[%s1302_s25 + $0x60] sm:$0xff]   ;;  %v948_v21 = vld [vmem:[%s1302_s25 + $0x68] sm:$0xff]  }
  0x60   : > { %833 = vmatprep.subr.bf16.mxu1 %v933_v6  ;;  %v941_v14 = vld [vmem:[%s1302_s25 + $0xd8] sm:$0xff]   ;;  %v945_v18 = vld [vmem:[%s1302_s25 + $0xe0] sm:$0xff]   ;;  %v949_v22 = vld [vmem:[%s1302_s25 + $0xe8] sm:$0xff]  }
  0x61   : > { %v942_v15 = vld [vmem:[%s1302_s25 + $0x18] sm:$0xff]   ;;  %v946_v19 = vld [vmem:[%s1302_s25 + $0x20] sm:$0xff]   ;;  %v950_v23 = vld [vmem:[%s1302_s25 + $0x28] sm:$0xff]  }
  0x62   : > { %812 = vmatpush3.bf16.msra.mxu0 %v934_v7  ;;  %v943_v16 = vld [vmem:[%s1302_s25 + $0x98] sm:$0xff]   ;;  %v947_v20 = vld [vmem:[%s1302_s25 + $0xa0] sm:$0xff]   ;;  %v951_v24 = vld [vmem:[%s1302_s25 + $0xa8] sm:$0xff]  }
  0x63   : > { %834 = vmatpush3.bf16.msra.mxu1 %v935_v8  ;;  %813 = vmatprep.subr.bf16.mxu0 %v936_v9  ;;  %v952_v25 = vld [vmem:[%s1302_s25 + $0x70] sm:$0xff]   ;;  %v956_v29 = vld [vmem:[%s1302_s25 + $0x78] sm:$0xff]  }
  0x64   : > { %835 = vmatprep.subr.bf16.mxu1 %v937_v10  ;;  %v953_v26 = vld [vmem:[%s1302_s25 + $0xf0] sm:$0xff]   ;;  %v957_v30 = vld [vmem:[%s1302_s25 + $0xf8] sm:$0xff]  }
  0x65   : > { %v954_v27 = vld [vmem:[%s1302_s25 + $0x30] sm:$0xff]   ;;  %v958_v31 = vld [vmem:[%s1302_s25 + $0x38] sm:$0xff]  }
  0x66   : > { %814 = vmatpush3.bf16.msra.mxu0 %v938_v11  ;;  %v955_v28 = vld [vmem:[%s1302_s25 + $0xb0] sm:$0xff]   ;;  %v959_v32 = vld [vmem:[%s1302_s25 + $0xb8] sm:$0xff]  }
  0x67   : > { %836 = vmatpush3.bf16.msra.mxu1 %v939_v12  ;;  %815 = vmatprep.subr.bf16.mxu0 %v940_v13  ;;  %v960_v33 = vld [vmem:[%s1296_s27] ss:$16 sps:$4 sm:$0xff]   ;;  %v962_v34 = vld [vmem:[%s1296_s27 + $0x4] ss:$16 sps:$4 sm:$0xff]   ;;  %v963_v35 = vld [vmem:[%s1296_s27 + $0x8] ss:$16 sps:$4 sm:$0xff]  }
  0x68   : > { %837 = vmatprep.subr.bf16.mxu1 %v941_v14  ;;  %v965_v36 = vld [vmem:[%s1296_s27 + $0xc] ss:$16 sps:$4 sm:$0xff]   ;;  %564 = vmatprep.mubr.bf16.mxu0 %v962_v34  ;;  %v250_v46 = vld [vmem:[#allocation2] sm:$0xff] }
  0x69   : > { %605 = vmatprep.mubr.bf16.mxu1 %v965_v36  ;;  %v251_v51 = vld [vmem:[#allocation2 + $0x8] sm:$0xff]  ;;  %v802_v56 = vld [vmem:[%s1397_s2] ss:$0 sm:$0xff] (!%p801_p12) }
  0x6a   : > { %816 = vmatpush3.bf16.msra.mxu0 %v942_v15 }
  0x6b   : > { %838 = vmatpush3.bf16.msra.mxu1 %v943_v16  ;;  %817 = vmatprep.subr.bf16.mxu0 %v944_v17 }
  0x6c   : > { %839 = vmatprep.subr.bf16.mxu1 %v945_v18 }
  0x6e   : > { %818 = vmatpush3.bf16.msra.mxu0 %v946_v19 }
  0x6f   : > { %840 = vmatpush3.bf16.msra.mxu1 %v947_v20  ;;  %819 = vmatprep.subr.bf16.mxu0 %v948_v21 }
  0x70   : > { %841 = vmatprep.subr.bf16.mxu1 %v949_v22 }
  0x72   : > { %820 = vmatpush3.bf16.msra.mxu0 %v950_v23 }
  0x73   : > { %842 = vmatpush3.bf16.msra.mxu1 %v951_v24  ;;  %821 = vmatprep.subr.bf16.mxu0 %v952_v25 }
  0x74   : > { %843 = vmatprep.subr.bf16.mxu1 %v953_v26 }
  0x76   : > { %822 = vmatpush3.bf16.msra.mxu0 %v954_v27 }
  0x77   : > { %844 = vmatpush3.bf16.msra.mxu1 %v955_v28  ;;  %823 = vmatprep.subr.bf16.mxu0 %v956_v29 }
  0x78   : > { %845 = vmatprep.subr.bf16.mxu1 %v957_v30 }
  0x7a   : > { %824 = vmatpush3.bf16.msra.mxu0 %v958_v31 }
  0x7b   : > { %846 = vmatpush3.bf16.msra.mxu1 %v959_v32 }
  0x7d   : > { %565 = vmatmul.mubr.bf16.vlgmr.msra.gmra.mrb[0].mxu0 %v960_v33 }
  0x7e   : > { %606 = vmatmul.mubr.bf16.vlgmr.msra.gmra.mrb[0].mxu1 %v963_v35 }
 0x150   : > { %v825_v37 = vpop.f32.mrb[0].mxu0 }
 0x151   : > { %v847_v38 = vpop.f32.mrb[0].mxu1  ;;  %v826_v39 = vpop.f32.mrb[1].mxu0 }
 0x152   : > { %v827_v40 = vadd.f32 %v826_v39, %v825_v37  ;;  %v848_v41 = vpop.f32.mrb[1].mxu1  ;;  %v828_v42 = vpop.f32.mrb[2].mxu0 }
 0x153   : > { %v849_v43 = vadd.f32 %v848_v41, %v847_v38  ;;  %v850_v44 = vpop.f32.mrb[2].mxu1  ;;  %v829_v45 = vpop.f32.mrb[3].mxu0 }
 0x154   : > { %v830_v47 = vadd.f32 %v829_v45, %v828_v42  ;;  %v851_v48 = vpop.f32.mrb[3].mxu1 }
 0x155   : > { %v608_v49 = vadd.f32 %v849_v43, %v827_v40  ;;  %v852_v50 = vadd.f32 %v851_v48, %v850_v44  ;;  %621 = sbr.rel (%p801_p12) target bundleno = 672 (0x2a0), region = 48 }
 0x157   : > { %v614_v52 = vadd.f32 %v608_v49, %v250_v46  ;;  %v611_v53 = vadd.f32 %v852_v50, %v830_v47 }
 0x159   : > { %616 = vst [vmem:[#allocation2] sm:$0xff] %v614_v52  ;;  %v615_v54 = vadd.f32 %v611_v53, %v251_v51 }
 0x15b   : > { %617 = vst [vmem:[#allocation2 + $0x8] sm:$0xff] %v615_v54 }
 0x160   : > { %v622_v55 = vld [vmem:[#allocation2] sm:$0xff] }
 0x161   : > { %v631_v58 = vadd.f32 %v802_v56, %v622_v55 }
 0x162   : > { %v623_v57 = vld [vmem:[#allocation2 + $0x8] sm:$0xff] }
 0x163   : > { %633 = vmax.xlane.f32.xlu0 %v631_v58  ;;  %v632_v59 = vadd.f32 %v802_v56, %v623_v57 }
 0x167   : > { %635 = vmax.xlane.f32.xlu0 %v632_v59 }
 0x1f0   : > { %v634_v60 = vpop.xlane.xlu0 %633 }
 0x1f1   : > { %v637_v61 = vsub.f32 %v631_v58, %v634_v60 }
 0x1f3   : > { %v639_v62 = vmul.f32 1.442695, %v637_v61 }
 0x1f4   : > { %v636_v63 = vpop.xlane.xlu0 %635 }
 0x1f5   : > { %966 = vpow2.f32 %v639_v62  ;;  %v638_v0 = vsub.f32 %v632_v59, %v636_v63 }
 0x1f7   : > { %v641_v1 = vmul.f32 1.442695, %v638_v0 }
 0x1f9   : > { %968 = vpow2.f32 %v641_v1 }
 0x1ff   : > { %v967_v2 = vpop.eup %966 }
 0x200   : > { %643 = vadd.xlane.f32.xlu1 %v967_v2 }
 0x203   : > { %v969_v3 = vpop.eup %968 }
 0x204   : > { %645 = vadd.xlane.f32.xlu1 %v969_v3 }
 0x28d   : > { %v644_v4 = vpop.xlane.xlu1 %643 }
 0x28e   : > { %970 = vrcp.f32 %v644_v4 }
 0x291   : > { %v646_v5 = vpop.xlane.xlu1 %645 }
 0x292   : > { %972 = vrcp.f32 %v646_v5 }
 0x298   : > { %v971_v6 = vpop.eup %970 }
 0x299   : > { %v649_v7 = vmul.f32 %v971_v6, %v967_v2 }
 0x29b   : > { %651 = vst [vmem:[#allocation8] sm:$0xff] %v649_v7 }
 0x29c   : > { %v973_v8 = vpop.eup %972 }
 0x29d   : > { %v650_v9 = vmul.f32 %v973_v8, %v969_v3 }
 0x29f   : > { %652 = vst [vmem:[#allocation8 + $0x8] sm:$0xff] %v650_v9 }
 0x2a0 PF: > { %p1351_p4 = scmp.eq.s32.totalorder %s752_s18, 1  ;;  %s1128_s20 = smov [#allocation8]  }
 0x2a1   : > { %s662_s22 = sshll.u32 %s1128_s20, 4  ;;  %s663_s22 = int_to_ptr.vmem [resolvable:$true] %s662_s22 }
 0x2a2   : > { %s1034_s30 = scalar_lea.vmem %s663_s22, 256  ;;  %p1041_p0 = scmp.lt.s32.totalorder %s663_s22, %s663_s22 }
 0x2a3   : > { %p1035_p8 = scmp.ne.s32.totalorder %s663_s22, %s1034_s30  ;;  %p1042_p10 = scmp.lt.s32.totalorder %s1034_s30, %s1034_s30 }
 0x2a5   : > { %p1036_p2 = pnand %p1035_p8, %p1351_p4  ;;  %p1043_p5 = por %p1042_p10, %p1041_p0 }
 0x2a7   : > { %p1037_p3 = pneg %p1036_p2 }
 0x2a9   : > { %p1044_p6 = pnand %p1043_p5, %p1037_p3 }
 0x2ab   : > { %1047 = shalt.err (!%p1044_p6)
}
 0x2ac   : > { %s1048_s18 = scalar_lea.hbm %s1398_s3, 256 }
 0x2ad   : > { %p1049_p11 = scmp.ne.s32.totalorder %s1398_s3, %s1048_s18  ;;  %p1054_p7 = scmp.lt.u32.totalorder %s1048_s18, %s1398_s3 }
 0x2af   : > { %p1050_p13 = pnand %p1049_p11, %p1351_p4 }
 0x2b1   : > { %p1051_p1 = pneg %p1050_p13 }
 0x2b3   : > { %p1056_p9 = pnand %p1054_p7, %p1051_p1 }
 0x2b5   : > { %1059 = shalt.err (!%p1056_p9)
}
 0x2b6   : > { %s1129_s21 = smov 128   ;;  %s1130_s5 = smov 8  }
 0x2b7   : > { %858 = dma.vmem_to_hbm [thread:$0]  (%p1351_p4), %s663_s22, 256, %s1398_s3, [#allocation5], %s1129_s21, %s1129_s21, %s1130_s5  }
 0x2b8   : > { %1093 = dma.done.wait (%p1351_p4), [#allocation5], 256  }
 0x2b9   : > { %1095 = vsyncadd (%p1351_p4), [#allocation5], 4294967040 }
 0x2ba PF: > { %s20_s17 = sadd.s32 1, %s1118_s17   ;;  %s1407_s12 = smov %s1102_s13 }
 0x2bb   : > { %p17_p12 = scmp.ge.s32.totalorder %s20_s17, 4   ;;  %s1408_s13 = smov %s1106_s14 }
 0x2bc   : > { %s1409_s14 = smov %s1202_s24  ;;  %s1410_s15 = smov %s1114_s16 }
 0x2bd   : > { %s1411_s16 = smov %s1413_s19  ;;  %19 = sbr.rel (!%p17_p12) target bundleno = 7 (0x7), region = 91 }
 0x2c4   :  { %678 = vsyncpa [#allocation4], 1 }
 0x2c5   :  { %680 = vsyncpa [#allocation4 + $0x1], 1 }
 0x2c6   :  { %681 = vsyncpa [#allocation7], 1 }
 0x2c7   :  { %683 = vsyncpa [#allocation7 + $0x1], 1 }
 0x2c8   :  { %684 = vsyncpa [#allocation5], 1 }
 0x2c9   :  { %686 = vsyncpa [#allocation5 + $0x1], 1 }

</bundles_post_ra>
